<compile_context>
chip_gen: v7x
topology: tpu7x:2x2x1
jax: 0.10.0
libtpu: 0.0.40
codegen_flags: <defaults>
</compile_context>

<pallas_src>
import functools

import jax
import jax.numpy as jnp
from jax.experimental import pallas as pl
from jax.experimental.pallas import tpu as pltpu


def _round_up(x: int, m: int) -> int:
    return ((x + m - 1) // m) * m


def _row_tiling(n: int):
    """Pick a destination-row tile (multiple of 8) and the padded row count."""
    n8 = _round_up(max(n, 8), 8)
    if n8 <= 256:
        return n8, n8  # single tile
    return 256, _round_up(n, 256)


def _vmem_limit(block_bytes: int) -> int:
    # double-buffer headroom + compiler scratch, clamped to v7x-safe range
    return int(min(max(2 * block_bytes + (1 << 20), 4 << 20), 64 << 20))


# ----------------------------------------------------------------------------
# Kernel 1: fused per-node-type projection  y = relu(x_blockdiag @ W_stack + bias[type])
# ----------------------------------------------------------------------------
def _proj_relu_kernel(x_ref, w_ref, b_ref, o_ref, *, row_spans, n_real):
    y = jnp.dot(x_ref[...], w_ref[...], preferred_element_type=jnp.float32)
    n_pad = o_ref.shape[0]
    if n_pad > n_real:  # keep padded rows exactly zero
        o_ref[n_real:, :] = jnp.zeros((n_pad - n_real, o_ref.shape[1]), o_ref.dtype)
    for t, (off, cnt) in enumerate(row_spans):
        bt = b_ref[t : t + 1, :]  # (1, hidden_pad) broadcast per node-type row range
        o_ref[off : off + cnt, :] = jnp.maximum(y[off : off + cnt, :] + bt, 0.0).astype(
            o_ref.dtype
        )


def fused_proj_relu(xs, ws, bs, hidden_pad, n_pad):
    """One pallas_call for all node-type projections (block-diagonal contraction)."""
    dins = [int(w.shape[0]) for w in ws]
    counts = [int(x.shape[0]) for x in xs]
    sum_din = sum(dins)
    k_pad = _round_up(sum_din, 128)  # lane-aligned contraction dim
    n_total = sum(counts)

    blocks, off = [], 0
    for x, d in zip(xs, dins):
        blocks.append(jnp.pad(x, ((0, 0), (off, k_pad - off - d))))
        off += d
    x_block = jnp.concatenate(blocks, axis=0)
    x_block = jnp.pad(x_block, ((0, n_pad - n_total), (0, 0))).astype(jnp.bfloat16)

    w_stack = jnp.concatenate(
        [jnp.pad(w, ((0, 0), (0, hidden_pad - int(w.shape[1])))) for w in ws], axis=0
    )
    w_stack = jnp.pad(w_stack, ((0, k_pad - sum_din), (0, 0))).astype(jnp.bfloat16)

    b_mat = jnp.stack(
        [jnp.pad(b, (0, hidden_pad - int(b.shape[0]))) for b in bs], axis=0
    ).astype(jnp.float32)

    row_spans, off = [], 0
    for c in counts:
        row_spans.append((off, c))
        off += c

    block_bytes = (
        n_pad * k_pad * 2 + k_pad * hidden_pad * 2 + b_mat.size * 4 + n_pad * hidden_pad * 2
    )

    return pl.pallas_call(
        functools.partial(_proj_relu_kernel, row_spans=tuple(row_spans), n_real=n_total),
        out_shape=jax.ShapeDtypeStruct((n_pad, hidden_pad), jnp.bfloat16),
        in_specs=[pl.BlockSpec(memory_space=pltpu.MemorySpace.VMEM)] * 3,
        out_specs=pl.BlockSpec(memory_space=pltpu.MemorySpace.VMEM),
        compiler_params=pltpu.CompilerParams(vmem_limit_bytes=_vmem_limit(block_bytes)),
    )(x_block, w_stack, b_mat)


# ----------------------------------------------------------------------------
# Kernel 2: per-layer feature transform  y = x @ [basis_0 .. basis_{B-1}, W_root]
# One wide matmul; bf16 messages, f32 root term.  Grid over destination rows.
# ----------------------------------------------------------------------------
def _feat_kernel(x_ref, w_ref, msg_ref, *maybe_root, num_bases, dout_pad):
    y = jnp.dot(x_ref[...], w_ref[...], preferred_element_type=jnp.float32)
    msg_ref[...] = y[:, : num_bases * dout_pad].astype(msg_ref.dtype)
    if maybe_root:
        maybe_root[0][...] = y[:, num_bases * dout_pad :]


def rgcn_feature_transform(x, wcat, *, num_bases, dout_pad, has_root, tm):
    n_pad, din_pad = int(x.shape[0]), int(x.shape[1])
    wtot = int(wcat.shape[1])
    grid = (n_pad // tm,)

    out_shapes = [jax.ShapeDtypeStruct((n_pad, num_bases * dout_pad), jnp.bfloat16)]
    out_specs = [pl.BlockSpec((tm, num_bases * dout_pad), lambda i: (i, 0))]
    if has_root:
        out_shapes.append(jax.ShapeDtypeStruct((n_pad, dout_pad), jnp.float32))
        out_specs.append(pl.BlockSpec((tm, dout_pad), lambda i: (i, 0)))

    block_bytes = (
        tm * din_pad * 2
        + din_pad * wtot * 2
        + tm * num_bases * dout_pad * 2
        + (tm * dout_pad * 4 if has_root else 0)
    )
    flops = 2 * n_pad * din_pad * wtot
    bytes_acc = (
        n_pad * din_pad * 2
        + din_pad * wtot * 2
        + n_pad * num_bases * dout_pad * 2
        + (n_pad * dout_pad * 4 if has_root else 0)
    )

    res = pl.pallas_call(
        functools.partial(_feat_kernel, num_bases=num_bases, dout_pad=dout_pad),
        out_shape=tuple(out_shapes),
        grid=grid,
        in_specs=[
            pl.BlockSpec((tm, din_pad), lambda i: (i, 0)),
            pl.BlockSpec((din_pad, wtot), lambda i: (0, 0)),  # resident weights
        ],
        out_specs=tuple(out_specs),
        compiler_params=pltpu.CompilerParams(
            dimension_semantics=("parallel",),
            vmem_limit_bytes=_vmem_limit(block_bytes),
        ),
        cost_estimate=pl.CostEstimate(
            flops=int(flops), transcendentals=0, bytes_accessed=int(bytes_acc)
        ),
    )(x, wcat)
    if has_root:
        return res[0], res[1]
    return res[0], None


# ----------------------------------------------------------------------------
# Kernel 3: aggregation  out = Yc @ msg_flat (+ root) (+ relu)
#   Yc[n, m*B + b] = sum_r comp[r,b] * adj_norm[r,n,m]   (pre-combined in wrapper)
#   msg_flat[m*B + b, :] = (x @ basis_b)[m, :]           (free reshape of kernel-2 output)
# Single MXU matmul with K = N*B; grid over destination rows ("parallel").
# ----------------------------------------------------------------------------
def _aggr_kernel(*refs, has_root, apply_relu):
    if has_root:
        adj_ref, msg_ref, root_ref, o_ref = refs
    else:
        adj_ref, msg_ref, o_ref = refs
        root_ref = None
    acc = jnp.dot(adj_ref[...], msg_ref[...], preferred_element_type=jnp.float32)
    if has_root:
        acc = acc + root_ref[...]
    if apply_relu:
        acc = jnp.maximum(acc, 0.0)
    o_ref[...] = acc.astype(o_ref.dtype)


def rgcn_aggregate(adj_mix, msg_flat, root, *, apply_relu, out_dtype, tm):
    n_pad, k = int(adj_mix.shape[0]), int(adj_mix.shape[1])
    dout_pad = int(msg_flat.shape[1])
    has_root = root is not None
    grid = (n_pad // tm,)

    in_specs = [
        pl.BlockSpec((tm, k), lambda i: (i, 0)),          # mixed adjacency tile
        pl.BlockSpec((k, dout_pad), lambda i: (0, 0)),    # resident stacked messages
    ]
    args = [adj_mix, msg_flat]
    if has_root:
        in_specs.append(pl.BlockSpec((tm, dout_pad), lambda i: (i, 0)))
        args.append(root)

    out_itemsize = 4 if out_dtype == jnp.float32 else 2
    block_bytes = (
        tm * k * 2
        + k * dout_pad * 2
        + (tm * dout_pad * 4 if has_root else 0)
        + tm * dout_pad * out_itemsize
    )
    flops = 2 * n_pad * k * dout_pad + (n_pad * dout_pad if has_root else 0)
    bytes_acc = (
        n_pad * k * 2
        + k * dout_pad * 2
        + (n_pad * dout_pad * 4 if has_root else 0)
        + n_pad * dout_pad * out_itemsize
    )

    return pl.pallas_call(
        functools.partial(_aggr_kernel, has_root=has_root, apply_relu=apply_relu),
        out_shape=jax.ShapeDtypeStruct((n_pad, dout_pad), out_dtype),
        grid=grid,
        in_specs=in_specs,
        out_specs=pl.BlockSpec((tm, dout_pad), lambda i: (i, 0)),
        compiler_params=pltpu.CompilerParams(
            dimension_semantics=("parallel",),
            vmem_limit_bytes=_vmem_limit(block_bytes),
        ),
        cost_estimate=pl.CostEstimate(
            flops=int(flops), transcendentals=0, bytes_accessed=int(bytes_acc)
        ),
    )(*args)


# ----------------------------------------------------------------------------
# Glue (plain JAX): adjacency construction, padding, model driver
# ----------------------------------------------------------------------------
def build_norm_adj(edge_index, edge_type, num_nodes_pad, num_relations):
    """Row-normalized per-relation adjacency (PyG RGCNConv mean aggregation)."""
    src, dst = edge_index[0], edge_index[1]
    adj = jnp.zeros((num_relations, num_nodes_pad, num_nodes_pad), jnp.float32)
    adj = adj.at[edge_type, dst, src].add(1.0)
    deg = adj.sum(axis=2, keepdims=True)
    return adj / jnp.maximum(deg, 1.0)


def rgcn_forward(x_dict, edge_index, edge_type, params, node_types):
    # per node type: Linear -> ReLU -> Dropout(identity in eval), fused into one call
    xs = [x_dict[nt] for nt in node_types]
    ws = [params["proj"][nt][0] for nt in node_types]
    bs = [params["proj"][nt][1] for nt in node_types]
    hidden = int(ws[0].shape[1])
    hidden_pad = _round_up(hidden, 128)
    n_total = sum(int(x.shape[0]) for x in xs)
    tm, n_pad = _row_tiling(n_total)

    x_pad = fused_proj_relu(xs, ws, bs, hidden_pad, n_pad)  # (n_pad, hidden_pad) bf16

    convs = params["convs"]
    # static counts derived from parameter SHAPES (jit-safe, never traced values)
    num_rel = int(convs[0]["comp"].shape[0])
    num_bases = int(convs[0]["comp"].shape[1])

    adj = build_norm_adj(edge_index, edge_type, n_pad, num_rel)  # (R, n_pad, n_pad) f32

    x_latents = [x_pad[:n_total, :hidden]]
    cur = x_pad
    for li, conv in enumerate(convs):
        is_last = li == len(convs) - 1
        basis = conv["basis"]  # (B, din, dout)
        comp = conv["comp"].astype(jnp.float32)  # (R, B)
        din, dout = int(basis.shape[1]), int(basis.shape[2])
        din_pad = int(cur.shape[1])
        dout_pad = _round_up(dout, 128)
        has_root = conv["root"] is not None

        # stack padded bases (and root) along output columns -> one wide MXU matmul
        w_blocks = [
            jnp.pad(basis[b], ((0, din_pad - din), (0, dout_pad - dout)))
            for b in range(num_bases)
        ]
        if has_root:
            w_blocks.append(
                jnp.pad(conv["root"], ((0, din_pad - din), (0, dout_pad - dout)))
            )
        wcat = jnp.concatenate(w_blocks, axis=1).astype(jnp.bfloat16)

        # comp pre-combined into the adjacency (R -> B reduction of adjacency matmuls);
        # single fused einsum + bf16 cast per layer.
        adj_mix = (
            jnp.einsum("rb,rnm->nmb", comp, adj)
            .reshape(n_pad, n_pad * num_bases)
            .astype(jnp.bfloat16)
        )

        msg, root = rgcn_feature_transform(
            cur, wcat, num_bases=num_bases, dout_pad=dout_pad, has_root=has_root, tm=tm
        )
        msg_flat = msg.reshape(n_pad * num_bases, dout_pad)  # row = src*B + b (free)

        cur = rgcn_aggregate(
            adj_mix,
            msg_flat,
            root,
            apply_relu=not is_last,
            out_dtype=jnp.float32 if is_last else jnp.bfloat16,
            tm=tm,
        )
        if not is_last:
            x_latents.append(cur[:n_total, :dout])  # dropout = identity in eval

    out = cur[:n_total, : int(convs[-1]["basis"].shape[2])]
    return out, x_latents


# ----------------------------------------------------------------------------
# Deterministic parameter construction
# ----------------------------------------------------------------------------
def make_params(key, node_in_dims, hidden_dim, out_dim, num_relations, num_bases, num_layers):
    keys = iter(jax.random.split(key, 64))
    proj = {}
    for nt, din in node_in_dims.items():
        w = jax.random.normal(next(keys), (din, hidden_dim), jnp.float32) * 0.1
        b = jax.random.normal(next(keys), (hidden_dim,), jnp.float32) * 0.1
        proj[nt] = (w, b)

    convs = []
    # layer 0: hidden -> hidden, root_weight=False
    # middle layers (num_layers - 2): hidden -> hidden, root_weight=True
    # last layer: hidden -> out, root_weight=True
    layer_cfgs = [(hidden_dim, hidden_dim, False)]
    layer_cfgs += [(hidden_dim, hidden_dim, True)] * max(0, num_layers - 2)
    layer_cfgs += [(hidden_dim, out_dim, True)]
    for din, dout, root_weight in layer_cfgs:
        basis = jax.random.normal(next(keys), (num_bases, din, dout), jnp.float32) * 0.1
        comp = jax.random.normal(next(keys), (num_relations, num_bases), jnp.float32) * 0.1
        root = (
            jax.random.normal(next(keys), (din, dout), jnp.float32) * 0.1
            if root_weight
            else None
        )
        convs.append({"basis": basis, "comp": comp, "root": root})

    return {"proj": proj, "convs": convs}


if __name__ == "__main__":
    key = jax.random.PRNGKey(0)
    k_feat_a, k_feat_p, k_edge, k_etype, k_param = jax.random.split(key, 5)

    # metadata: two node types, two edge types (relations)
    node_types = ["author", "paper"]
    node_in_dims = {"author": 24, "paper": 40}
    node_counts = {"author": 8, "paper": 8}
    hidden_dim, out_dim = 32, 16
    num_relations, num_bases, num_layers = 2, 2, 2

    x_dict = {
        "author": jax.random.normal(
            k_feat_a, (node_counts["author"], node_in_dims["author"]), jnp.float32
        ),
        "paper": jax.random.normal(
            k_feat_p, (node_counts["paper"], node_in_dims["paper"]), jnp.float32
        ),
    }

    num_nodes = sum(node_counts.values())
    num_edges = 32
    edge_index = jax.random.randint(k_edge, (2, num_edges), 0, num_nodes, jnp.int32)
    edge_type = jax.random.randint(k_etype, (num_edges,), 0, num_relations, jnp.int32)

    params = make_params(
        k_param, node_in_dims, hidden_dim, out_dim, num_relations, num_bases, num_layers
    )

    fwd = jax.jit(lambda xd, ei, et, p: rgcn_forward(xd, ei, et, p, node_types))
    out, x_latents = fwd(x_dict, edge_index, edge_type, params)
    jax.block_until_ready(out)
    for xl in x_latents:
        jax.block_until_ready(xl)

    assert out.shape == (num_nodes, out_dim)
    assert x_latents[0].shape == (num_nodes, hidden_dim)
    assert x_latents[1].shape == (num_nodes, hidden_dim)
    print("KERNEL_OK")
</pallas_src>

<mosaic_0001>
module attributes {stable_mosaic.version = 11 : i64} {
  func.func private @main(%arg0: i32) attributes {dimension_semantics = [#tpu.dimension_semantics<core_parallel>], iteration_bounds = array<i64: 2>, tpu.core_type = #tpu.core_type<sc_scalar_subcore>, window_params = []} {
    return
  }
}

module attributes {stable_mosaic.version = 11 : i64} {
  func.func private @main(%arg0: i32) attributes {dimension_semantics = [#tpu.dimension_semantics<core_parallel>], iteration_bounds = array<i64: 2>, tpu.core_type = #tpu.core_type<sc_scalar_subcore>, window_params = []} {
    return
  }
}

module attributes {stable_mosaic.version = 11 : i64} {
  func.func @_proj_relu_kernel(%arg0: memref<16x128xbf16, #tpu.memory_space<vmem>>, %arg1: memref<128x128xbf16, #tpu.memory_space<vmem>>, %arg2: memref<2x128xf32, #tpu.memory_space<vmem>>, %arg3: memref<16x128xbf16, #tpu.memory_space<vmem>>) attributes {dimension_semantics = [], scalar_prefetch = 0 : i64, scratch_operands = 0 : i64, tpu.core_type = #tpu.core_type<tc>} {
    %c0 = arith.constant 0 : index
    %c0_0 = arith.constant 0 : index
    %0 = vector.load %arg0[%c0, %c0_0] : memref<16x128xbf16, #tpu.memory_space<vmem>>, vector<16x128xbf16>
    %c0_1 = arith.constant 0 : index
    %c0_2 = arith.constant 0 : index
    %1 = vector.load %arg1[%c0_1, %c0_2] : memref<128x128xbf16, #tpu.memory_space<vmem>>, vector<128x128xbf16>
    %cst = arith.constant dense<0.000000e+00> : vector<16x128xf32>
    %2 = tpu.matmul %0, %1, %cst {dimension_numbers = #tpu.dot_dimension_numbers<[1], [0], [0], [1], [0, 0, 1, 1], [], []>} : vector<16x128xbf16>, vector<128x128xbf16>, vector<16x128xf32> -> vector<16x128xf32>
    %c0_3 = arith.constant 0 : index
    %c0_4 = arith.constant 0 : index
    %3 = vector.load %arg2[%c0_3, %c0_4] : memref<2x128xf32, #tpu.memory_space<vmem>>, vector<1x128xf32>
    %4 = vector.extract_strided_slice %2 {offsets = [0, 0], sizes = [8, 128], strides = [1, 1]} : vector<16x128xf32> to vector<8x128xf32>
    %5 = vector.broadcast %3 : vector<1x128xf32> to vector<8x128xf32>
    %6 = arith.addf %4, %5 : vector<8x128xf32>
    %cst_5 = arith.constant 0.000000e+00 : f32
    %7 = vector.broadcast %cst_5 : f32 to vector<8x128xf32>
    %8 = arith.maximumf %6, %7 : vector<8x128xf32>
    %9 = arith.truncf %8 : vector<8x128xf32> to vector<8x128xbf16>
    %c0_6 = arith.constant 0 : index
    %c0_7 = arith.constant 0 : index
    %10 = vector.load %arg3[%c0_6, %c0_7] : memref<16x128xbf16, #tpu.memory_space<vmem>>, vector<8x128xbf16>
    tpu.vector_store %arg3[%c0_6, %c0_7], %9 {strides = array<i32>} : memref<16x128xbf16, #tpu.memory_space<vmem>>, vector<8x128xbf16>,
    %c1 = arith.constant 1 : index
    %c0_8 = arith.constant 0 : index
    %11 = vector.load %arg2[%c1, %c0_8] : memref<2x128xf32, #tpu.memory_space<vmem>>, vector<1x128xf32>
    %12 = vector.extract_strided_slice %2 {offsets = [8, 0], sizes = [8, 128], strides = [1, 1]} : vector<16x128xf32> to vector<8x128xf32>
    %13 = vector.broadcast %11 : vector<1x128xf32> to vector<8x128xf32>
    %14 = arith.addf %12, %13 : vector<8x128xf32>
    %cst_9 = arith.constant 0.000000e+00 : f32
    %15 = vector.broadcast %cst_9 : f32 to vector<8x128xf32>
    %16 = arith.maximumf %14, %15 : vector<8x128xf32>
    %17 = arith.truncf %16 : vector<8x128xf32> to vector<8x128xbf16>
    %c8 = arith.constant 8 : index
    %c0_10 = arith.constant 0 : index
    %18 = vector.load %arg3[%c8, %c0_10] : memref<16x128xbf16, #tpu.memory_space<vmem>>, vector<8x128xbf16>
    tpu.vector_store %arg3[%c8, %c0_10], %17 {strides = array<i32>} : memref<16x128xbf16, #tpu.memory_space<vmem>>, vector<8x128xbf16>,
    return
  }
}

module attributes {stable_mosaic.version = 11 : i64} {
  func.func @_feat_kernel(%arg0: i32, %arg1: memref<16x128xbf16, #tpu.memory_space<vmem>>, %arg2: memref<128x256xbf16, #tpu.memory_space<vmem>>, %arg3: memref<16x256xbf16, #tpu.memory_space<vmem>>) attributes {dimension_semantics = [#tpu.dimension_semantics<parallel>], iteration_bounds = array<i64: 1>, scalar_prefetch = 0 : i64, scratch_operands = 0 : i64, tpu.core_type = #tpu.core_type<tc>, window_params = [{transform_indices = @transform_0, window_bounds = array<i64: 16, 128>}, {pipeline_mode = #tpu.pipeline_mode<synchronous>, transform_indices = @transform_1, window_bounds = array<i64: 128, 256>}, {transform_indices = @transform_2, window_bounds = array<i64: 16, 256>}]} {
    %c0 = arith.constant 0 : index
    %c0_0 = arith.constant 0 : index
    %0 = vector.load %arg1[%c0, %c0_0] : memref<16x128xbf16, #tpu.memory_space<vmem>>, vector<16x128xbf16>
    %c0_1 = arith.constant 0 : index
    %c0_2 = arith.constant 0 : index
    %1 = vector.load %arg2[%c0_1, %c0_2] : memref<128x256xbf16, #tpu.memory_space<vmem>>, vector<128x256xbf16>
    %cst = arith.constant dense<0.000000e+00> : vector<16x256xf32>
    %2 = tpu.matmul %0, %1, %cst {dimension_numbers = #tpu.dot_dimension_numbers<[1], [0], [0], [1], [0, 0, 1, 1], [], []>} : vector<16x128xbf16>, vector<128x256xbf16>, vector<16x256xf32> -> vector<16x256xf32>
    %3 = arith.truncf %2 : vector<16x256xf32> to vector<16x256xbf16>
    %c0_3 = arith.constant 0 : index
    %c0_4 = arith.constant 0 : index
    %4 = vector.load %arg3[%c0_3, %c0_4] : memref<16x256xbf16, #tpu.memory_space<vmem>>, vector<16x256xbf16>
    tpu.vector_store %arg3[%c0_3, %c0_4], %3 {strides = array<i32>} : memref<16x256xbf16, #tpu.memory_space<vmem>>, vector<16x256xbf16>,
    return
  }
  func.func @transform_0(%arg0: i32) -> (i32, i32) {
    %c0_i32 = arith.constant 0 : i32
    %c0_i32_0 = arith.constant 0 : i32
    return %arg0, %c0_i32 : i32, i32
  }
  func.func @transform_1(%arg0: i32) -> (i32, i32) {
    %c0_i32 = arith.constant 0 : i32
    %c0_i32_0 = arith.constant 0 : i32
    %c0_i32_1 = arith.constant 0 : i32
    return %c0_i32, %c0_i32_0 : i32, i32
  }
  func.func @transform_2(%arg0: i32) -> (i32, i32) {
    %c0_i32 = arith.constant 0 : i32
    %c0_i32_0 = arith.constant 0 : i32
    return %arg0, %c0_i32 : i32, i32
  }
}

module attributes {stable_mosaic.version = 11 : i64} {
  func.func @_feat_kernel(%arg0: i32, %arg1: memref<16x128xbf16, #tpu.memory_space<vmem>>, %arg2: memref<128x384xbf16, #tpu.memory_space<vmem>>, %arg3: memref<16x256xbf16, #tpu.memory_space<vmem>>, %arg4: memref<16x128xf32, #tpu.memory_space<vmem>>) attributes {dimension_semantics = [#tpu.dimension_semantics<parallel>], iteration_bounds = array<i64: 1>, scalar_prefetch = 0 : i64, scratch_operands = 0 : i64, tpu.core_type = #tpu.core_type<tc>, window_params = [{transform_indices = @transform_0, window_bounds = array<i64: 16, 128>}, {pipeline_mode = #tpu.pipeline_mode<synchronous>, transform_indices = @transform_1, window_bounds = array<i64: 128, 384>}, {transform_indices = @transform_2, window_bounds = array<i64: 16, 256>}, {transform_indices = @transform_3, window_bounds = array<i64: 16, 128>}]} {
    %c0 = arith.constant 0 : index
    %c0_0 = arith.constant 0 : index
    %0 = vector.load %arg1[%c0, %c0_0] : memref<16x128xbf16, #tpu.memory_space<vmem>>, vector<16x128xbf16>
    %c0_1 = arith.constant 0 : index
    %c0_2 = arith.constant 0 : index
    %1 = vector.load %arg2[%c0_1, %c0_2] : memref<128x384xbf16, #tpu.memory_space<vmem>>, vector<128x384xbf16>
    %cst = arith.constant dense<0.000000e+00> : vector<16x384xf32>
    %2 = tpu.matmul %0, %1, %cst {dimension_numbers = #tpu.dot_dimension_numbers<[1], [0], [0], [1], [0, 0, 1, 1], [], []>} : vector<16x128xbf16>, vector<128x384xbf16>, vector<16x384xf32> -> vector<16x384xf32>
    %3 = vector.extract_strided_slice %2 {offsets = [0, 0], sizes = [16, 256], strides = [1, 1]} : vector<16x384xf32> to vector<16x256xf32>
    %4 = arith.truncf %3 : vector<16x256xf32> to vector<16x256xbf16>
    %c0_3 = arith.constant 0 : index
    %c0_4 = arith.constant 0 : index
    %5 = vector.load %arg3[%c0_3, %c0_4] : memref<16x256xbf16, #tpu.memory_space<vmem>>, vector<16x256xbf16>
    tpu.vector_store %arg3[%c0_3, %c0_4], %4 {strides = array<i32>} : memref<16x256xbf16, #tpu.memory_space<vmem>>, vector<16x256xbf16>,
    %6 = vector.extract_strided_slice %2 {offsets = [0, 256], sizes = [16, 128], strides = [1, 1]} : vector<16x384xf32> to vector<16x128xf32>
    %c0_5 = arith.constant 0 : index
    %c0_6 = arith.constant 0 : index
    %7 = vector.load %arg4[%c0_5, %c0_6] : memref<16x128xf32, #tpu.memory_space<vmem>>, vector<16x128xf32>
    tpu.vector_store %arg4[%c0_5, %c0_6], %6 {strides = array<i32>} : memref<16x128xf32, #tpu.memory_space<vmem>>, vector<16x128xf32>,
    return
  }
  func.func @transform_0(%arg0: i32) -> (i32, i32) {
    %c0_i32 = arith.constant 0 : i32
    %c0_i32_0 = arith.constant 0 : i32
    return %arg0, %c0_i32 : i32, i32
  }
  func.func @transform_1(%arg0: i32) -> (i32, i32) {
    %c0_i32 = arith.constant 0 : i32
    %c0_i32_0 = arith.constant 0 : i32
    %c0_i32_1 = arith.constant 0 : i32
    return %c0_i32, %c0_i32_0 : i32, i32
  }
  func.func @transform_2(%arg0: i32) -> (i32, i32) {
    %c0_i32 = arith.constant 0 : i32
    %c0_i32_0 = arith.constant 0 : i32
    return %arg0, %c0_i32 : i32, i32
  }
  func.func @transform_3(%arg0: i32) -> (i32, i32) {
    %c0_i32 = arith.constant 0 : i32
    %c0_i32_0 = arith.constant 0 : i32
    return %arg0, %c0_i32 : i32, i32
  }
}

module attributes {stable_mosaic.version = 11 : i64} {
  func.func @_aggr_kernel(%arg0: i32, %arg1: memref<16x32xbf16, #tpu.memory_space<vmem>>, %arg2: memref<32x128xbf16, #tpu.memory_space<vmem>>, %arg3: memref<16x128xbf16, #tpu.memory_space<vmem>>) attributes {dimension_semantics = [#tpu.dimension_semantics<parallel>], iteration_bounds = array<i64: 1>, scalar_prefetch = 0 : i64, scratch_operands = 0 : i64, tpu.core_type = #tpu.core_type<tc>, window_params = [{transform_indices = @transform_0, window_bounds = array<i64: 16, 32>}, {pipeline_mode = #tpu.pipeline_mode<synchronous>, transform_indices = @transform_1, window_bounds = array<i64: 32, 128>}, {transform_indices = @transform_2, window_bounds = array<i64: 16, 128>}]} {
    %c0 = arith.constant 0 : index
    %c0_0 = arith.constant 0 : index
    %0 = vector.load %arg1[%c0, %c0_0] : memref<16x32xbf16, #tpu.memory_space<vmem>>, vector<16x32xbf16>
    %c0_1 = arith.constant 0 : index
    %c0_2 = arith.constant 0 : index
    %1 = vector.load %arg2[%c0_1, %c0_2] : memref<32x128xbf16, #tpu.memory_space<vmem>>, vector<32x128xbf16>
    %cst = arith.constant dense<0.000000e+00> : vector<16x128xf32>
    %2 = tpu.matmul %0, %1, %cst {dimension_numbers = #tpu.dot_dimension_numbers<[1], [0], [0], [1], [0, 0, 1, 1], [], []>} : vector<16x32xbf16>, vector<32x128xbf16>, vector<16x128xf32> -> vector<16x128xf32>
    %cst_3 = arith.constant 0.000000e+00 : f32
    %3 = vector.broadcast %cst_3 : f32 to vector<16x128xf32>
    %4 = arith.maximumf %2, %3 : vector<16x128xf32>
    %5 = arith.truncf %4 : vector<16x128xf32> to vector<16x128xbf16>
    %c0_4 = arith.constant 0 : index
    %c0_5 = arith.constant 0 : index
    %6 = vector.load %arg3[%c0_4, %c0_5] : memref<16x128xbf16, #tpu.memory_space<vmem>>, vector<16x128xbf16>
    tpu.vector_store %arg3[%c0_4, %c0_5], %5 {strides = array<i32>} : memref<16x128xbf16, #tpu.memory_space<vmem>>, vector<16x128xbf16>,
    return
  }
  func.func @transform_0(%arg0: i32) -> (i32, i32) {
    %c0_i32 = arith.constant 0 : i32
    %c0_i32_0 = arith.constant 0 : i32
    return %arg0, %c0_i32 : i32, i32
  }
  func.func @transform_1(%arg0: i32) -> (i32, i32) {
    %c0_i32 = arith.constant 0 : i32
    %c0_i32_0 = arith.constant 0 : i32
    %c0_i32_1 = arith.constant 0 : i32
    return %c0_i32, %c0_i32_0 : i32, i32
  }
  func.func @transform_2(%arg0: i32) -> (i32, i32) {
    %c0_i32 = arith.constant 0 : i32
    %c0_i32_0 = arith.constant 0 : i32
    return %arg0, %c0_i32 : i32, i32
  }
}

module attributes {stable_mosaic.version = 11 : i64} {
  func.func @_aggr_kernel(%arg0: i32, %arg1: memref<16x32xbf16, #tpu.memory_space<vmem>>, %arg2: memref<32x128xbf16, #tpu.memory_space<vmem>>, %arg3: memref<16x128xf32, #tpu.memory_space<vmem>>, %arg4: memref<16x128xf32, #tpu.memory_space<vmem>>) attributes {dimension_semantics = [#tpu.dimension_semantics<parallel>], iteration_bounds = array<i64: 1>, scalar_prefetch = 0 : i64, scratch_operands = 0 : i64, tpu.core_type = #tpu.core_type<tc>, window_params = [{transform_indices = @transform_0, window_bounds = array<i64: 16, 32>}, {pipeline_mode = #tpu.pipeline_mode<synchronous>, transform_indices = @transform_1, window_bounds = array<i64: 32, 128>}, {transform_indices = @transform_2, window_bounds = array<i64: 16, 128>}, {transform_indices = @transform_3, window_bounds = array<i64: 16, 128>}]} {
    %c0 = arith.constant 0 : index
    %c0_0 = arith.constant 0 : index
    %0 = vector.load %arg1[%c0, %c0_0] : memref<16x32xbf16, #tpu.memory_space<vmem>>, vector<16x32xbf16>
    %c0_1 = arith.constant 0 : index
    %c0_2 = arith.constant 0 : index
    %1 = vector.load %arg2[%c0_1, %c0_2] : memref<32x128xbf16, #tpu.memory_space<vmem>>, vector<32x128xbf16>
    %cst = arith.constant dense<0.000000e+00> : vector<16x128xf32>
    %2 = tpu.matmul %0, %1, %cst {dimension_numbers = #tpu.dot_dimension_numbers<[1], [0], [0], [1], [0, 0, 1, 1], [], []>} : vector<16x32xbf16>, vector<32x128xbf16>, vector<16x128xf32> -> vector<16x128xf32>
    %c0_3 = arith.constant 0 : index
    %c0_4 = arith.constant 0 : index
    %3 = vector.load %arg3[%c0_3, %c0_4] : memref<16x128xf32, #tpu.memory_space<vmem>>, vector<16x128xf32>
    %4 = arith.addf %2, %3 : vector<16x128xf32>
    %c0_5 = arith.constant 0 : index
    %c0_6 = arith.constant 0 : index
    %5 = vector.load %arg4[%c0_5, %c0_6] : memref<16x128xf32, #tpu.memory_space<vmem>>, vector<16x128xf32>
    tpu.vector_store %arg4[%c0_5, %c0_6], %4 {strides = array<i32>} : memref<16x128xf32, #tpu.memory_space<vmem>>, vector<16x128xf32>,
    return
  }
  func.func @transform_0(%arg0: i32) -> (i32, i32) {
    %c0_i32 = arith.constant 0 : i32
    %c0_i32_0 = arith.constant 0 : i32
    return %arg0, %c0_i32 : i32, i32
  }
  func.func @transform_1(%arg0: i32) -> (i32, i32) {
    %c0_i32 = arith.constant 0 : i32
    %c0_i32_0 = arith.constant 0 : i32
    %c0_i32_1 = arith.constant 0 : i32
    return %c0_i32, %c0_i32_0 : i32, i32
  }
  func.func @transform_2(%arg0: i32) -> (i32, i32) {
    %c0_i32 = arith.constant 0 : i32
    %c0_i32_0 = arith.constant 0 : i32
    return %arg0, %c0_i32 : i32, i32
  }
  func.func @transform_3(%arg0: i32) -> (i32, i32) {
    %c0_i32 = arith.constant 0 : i32
    %c0_i32_0 = arith.constant 0 : i32
    return %arg0, %c0_i32 : i32, i32
  }
}

</mosaic_0001>

<bundles_post_ra>
// kernel: _lambda_.6
= control target key start
LH: loop header
LB: loop body
LE: loop exit
PB: predicated region body
PF: predicated region fallthrough
CT: control target
= control target key end

     0   :  { %v224_v1 = vmov 0   ;;  %s297_s1 = inlined_call_operand.vmem [shape: bf16[128,256], index: 1, kind: input, shape index: {}]   ;;  %s298_s0 = inlined_call_operand.vmem [shape: bf16[16,128], index: 0, kind: input, shape index: {}]   ;;  %s299_s2 = inlined_call_operand.vmem [shape: bf16[16,256], index: 2, kind: output, shape index: {}]  }
   0x1   :  { %v199_v0 = vld [vmem:[%s297_s1 + $0x4] ss:$8 sps:$4 sm:$0xff]   ;;  %148 = vmatprep.mubr.bf16.mxu0 %v224_v1  ;;  %v201_v2 = vld [vmem:[%s297_s1] ss:$8 sps:$4 sm:$0xff]   ;;  %v202_v3 = vld [vmem:[%s297_s1 + $0x14] ss:$8 sps:$4 sm:$0xff]  }
   0x2   :  { %116 = vmatprep.subr.bf16.mxu0 %v199_v0  ;;  %v204_v4 = vld [vmem:[%s297_s1 + $0x10] ss:$8 sps:$4 sm:$0xff]   ;;  %v205_v5 = vld [vmem:[%s297_s1 + $0x24] ss:$8 sps:$4 sm:$0xff]   ;;  %v207_v6 = vld [vmem:[%s297_s1 + $0x20] ss:$8 sps:$4 sm:$0xff]  }
   0x3   :  { %117 = vmatpush1.bf16.msra.mxu0 %v201_v2  ;;  %v208_v7 = vld [vmem:[%s297_s1 + $0x34] ss:$8 sps:$4 sm:$0xff]   ;;  %v210_v8 = vld [vmem:[%s297_s1 + $0x30] ss:$8 sps:$4 sm:$0xff]   ;;  %v211_v9 = vld [vmem:[%s297_s1 + $0x44] ss:$8 sps:$4 sm:$0xff]  }
   0x4   :  { %118 = vmatprep.subr.bf16.mxu0 %v202_v3  ;;  %v213_v10 = vld [vmem:[%s297_s1 + $0x40] ss:$8 sps:$4 sm:$0xff]   ;;  %v214_v11 = vld [vmem:[%s297_s1 + $0x54] ss:$8 sps:$4 sm:$0xff]   ;;  %v216_v12 = vld [vmem:[%s297_s1 + $0x50] ss:$8 sps:$4 sm:$0xff]  }
   0x5   :  { %v217_v13 = vld [vmem:[%s297_s1 + $0x64] ss:$8 sps:$4 sm:$0xff]   ;;  %v219_v14 = vld [vmem:[%s297_s1 + $0x60] ss:$8 sps:$4 sm:$0xff]   ;;  %v220_v15 = vld [vmem:[%s297_s1 + $0x74] ss:$8 sps:$4 sm:$0xff]  }
   0x6   :  { %v222_v16 = vld [vmem:[%s297_s1 + $0x70] ss:$8 sps:$4 sm:$0xff]   ;;  %v223_v17 = vld [vmem:[%s298_s0] sm:$0xff]  }
   0x7   :  { %119 = vmatpush1.bf16.msra.mxu0 %v204_v4 }
   0x8   :  { %120 = vmatprep.subr.bf16.mxu0 %v205_v5 }
   0xb   :  { %121 = vmatpush1.bf16.msra.mxu0 %v207_v6 }
   0xc   :  { %122 = vmatprep.subr.bf16.mxu0 %v208_v7 }
   0xf   :  { %123 = vmatpush1.bf16.msra.mxu0 %v210_v8 }
  0x10   :  { %124 = vmatprep.subr.bf16.mxu0 %v211_v9 }
  0x13   :  { %125 = vmatpush1.bf16.msra.mxu0 %v213_v10 }
  0x14   :  { %126 = vmatprep.subr.bf16.mxu0 %v214_v11 }
  0x17   :  { %127 = vmatpush1.bf16.msra.mxu0 %v216_v12 }
  0x18   :  { %128 = vmatprep.subr.bf16.mxu0 %v217_v13 }
  0x1b   :  { %129 = vmatpush1.bf16.msra.mxu0 %v219_v14 }
  0x1c   :  { %130 = vmatprep.subr.bf16.mxu0 %v220_v15 }
  0x1f   :  { %131 = vmatpush1.bf16.msra.mxu0 %v222_v16 }
  0x22   :  { %149 = vmatmul.mubr.bf16.vlgmr.msra.gmra.mrb[0].mxu0 %v223_v17 }
  0xf5   :  { %v150_v18 = vpop.f32.mrb[0].mxu0 }
  0xf6   :  { %v152_v19 = vpop.f32.mrb[1].mxu0 }
  0xf7   :  { %v196_v20 = vpack.c.bf16 %v152_v19, %v150_v18  ;;  %v154_v21 = vpop.f32.mrb[2].mxu0 }
  0xf8   :  { %v156_v22 = vpop.f32.mrb[3].mxu0 }
  0xf9   :  { %171 = vst [vmem:[%s299_s2] sm:$0xff] %v196_v20  ;;  %v197_v23 = vpack.c.bf16 %v156_v22, %v154_v21 }
  0xfb   :  { %172 = vst [vmem:[%s299_s2 + $0x8] sm:$0xff] %v197_v23 }

// kernel: _lambda_.5
= control target key start
LH: loop header
LB: loop body
LE: loop exit
PB: predicated region body
PF: predicated region fallthrough
CT: control target
= control target key end

     0   :  { %v201_v0 = vmov 0.0   ;;  %vm202_vm0 = vmmov 0   ;;  %s262_s1 = inlined_call_operand.vmem [shape: bf16[128,128], index: 1, kind: input, shape index: {}]   ;;  %s263_s0 = inlined_call_operand.vmem [shape: bf16[16,128], index: 0, kind: input, shape index: {}]   ;;  %s264_s2 = inlined_call_operand.vmem [shape: f32[2,128], index: 2, kind: input, shape index: {}]   ;;  %s265_s3 = inlined_call_operand.vmem [shape: bf16[16,128], index: 3, kind: output, shape index: {}]  }
   0x1   :  { %170 = vmatprep.subr.bf16.mxu0 %v201_v0  ;;  %v192_v1 = vld [vmem:[%s262_s1] sm:$0xff]   ;;  %186 = vmatprep.mubr.msk.bf16.mxu0 %vm202_vm0, %v201_v0  ;;  %v193_v2 = vld [vmem:[%s262_s1 + $0x8] sm:$0xff]   ;;  %v194_v3 = vld [vmem:[%s262_s1 + $0x10] sm:$0xff]  }
   0x2   :  { %171 = vmatpush3.bf16.msra.mxu0 %v192_v1  ;;  %v195_v4 = vld [vmem:[%s262_s1 + $0x18] sm:$0xff]   ;;  %v196_v5 = vld [vmem:[%s262_s1 + $0x20] sm:$0xff]   ;;  %v197_v6 = vld [vmem:[%s262_s1 + $0x28] sm:$0xff]  }
   0x3   :  { %172 = vmatprep.subr.bf16.mxu0 %v201_v0  ;;  %v198_v7 = vld [vmem:[%s262_s1 + $0x30] sm:$0xff]   ;;  %v199_v8 = vld [vmem:[%s262_s1 + $0x38] sm:$0xff]   ;;  %v200_v9 = vld [vmem:[%s263_s0] sm:$0xff]  }
   0x4   :  { %v159_v10 = vld [vmem:[%s264_s2] ss:$0 sm:$0xff]  ;;  %v160_v12 = vld [vmem:[%s264_s2 + $0x1] ss:$0 sm:$0xff] }
   0x6   :  { %173 = vmatpush3.bf16.msra.mxu0 %v193_v2 }
   0x7   :  { %174 = vmatprep.subr.bf16.mxu0 %v201_v0 }
   0xa   :  { %175 = vmatpush3.bf16.msra.mxu0 %v194_v3 }
   0xb   :  { %176 = vmatprep.subr.bf16.mxu0 %v201_v0 }
   0xe   :  { %177 = vmatpush3.bf16.msra.mxu0 %v195_v4 }
   0xf   :  { %178 = vmatprep.subr.bf16.mxu0 %v201_v0 }
  0x12   :  { %179 = vmatpush3.bf16.msra.mxu0 %v196_v5 }
  0x13   :  { %180 = vmatprep.subr.bf16.mxu0 %v201_v0 }
  0x16   :  { %181 = vmatpush3.bf16.msra.mxu0 %v197_v6 }
  0x17   :  { %182 = vmatprep.subr.bf16.mxu0 %v201_v0 }
  0x1a   :  { %183 = vmatpush3.bf16.msra.mxu0 %v198_v7 }
  0x1b   :  { %184 = vmatprep.subr.bf16.mxu0 %v201_v0 }
  0x1e   :  { %185 = vmatpush3.bf16.msra.mxu0 %v199_v8 }
  0x21   :  { %187 = vmatmul.mubr.bf16.vlgmr.msra.gmra.mrb[0].mxu0 %v200_v9 }
  0xf4   :  { %v121_v11 = vpop.f32.mrb[0].mxu0 }
  0xf5   :  { %v133_v13 = vadd.f32 %v159_v10, %v121_v11  ;;  %v188_v14 = vpop.f32.mrb[1].mxu0 }
  0xf6   :  { %v124_v15 = vpop.f32.mrb[2].mxu0 }
  0xf7   :  { %v134_v16 = vmax.f32 %v133_v13, 0.0  ;;  %v142_v17 = vadd.f32 %v160_v12, %v124_v15  ;;  %v189_v18 = vpop.f32.mrb[3].mxu0 }
  0xf9   :  { %v135_v19 = vpack.c.bf16 %v134_v16, %v134_v16  ;;  %v143_v20 = vmax.f32 %v142_v17, 0.0 }
  0xfb   :  { %136 = vst [vmem:[%s265_s3] sm:$0xf] %v135_v19  ;;  %v144_v21 = vpack.c.bf16 %v143_v20, %v143_v20 }
  0xfd   :  { %145 = vst [vmem:[%s265_s3 + $0x4] sm:$0xf] %v144_v21 }

// kernel: _lambda_.8
= control target key start
LH: loop header
LB: loop body
LE: loop exit
PB: predicated region body
PF: predicated region fallthrough
CT: control target
= control target key end

     0   :  { %v384_v1 = vmov 0.0   ;;  %v385_v2 = vmov 0   ;;  %vm386_vm0 = vmmov 0   ;;  %s494_s1 = inlined_call_operand.vmem [shape: bf16[128,384], index: 1, kind: input, shape index: {}]   ;;  %s495_s0 = inlined_call_operand.vmem [shape: bf16[16,128], index: 0, kind: input, shape index: {}]   ;;  %s496_s3 = inlined_call_operand.vmem [shape: f32[16,128], index: 3, kind: output, shape index: {1}]   ;;  %s497_s2 = inlined_call_operand.vmem [shape: bf16[16,256], index: 2, kind: output, shape index: {0}]  }
   0x1   :  { %v351_v0 = vld [vmem:[%s494_s1 + $0x4] ss:$12 sps:$4 sm:$0xff]   ;;  %328 = vmatprep.subr.bf16.mxu1 %v384_v1  ;;  %214 = vmatprep.mubr.bf16.mxu0 %v385_v2  ;;  %v353_v3 = vld [vmem:[%s494_s1] ss:$12 sps:$4 sm:$0xff]   ;;  %v354_v4 = vld [vmem:[%s494_s1 + $0x8] ss:$12 sps:$4 sm:$0xff]  }
   0x2   :  { %344 = vmatprep.mubr.msk.bf16.mxu1 %vm386_vm0, %v384_v1  ;;  %182 = vmatprep.subr.bf16.mxu0 %v351_v0  ;;  %v355_v5 = vld [vmem:[%s494_s1 + $0x1c] ss:$12 sps:$4 sm:$0xff]   ;;  %v357_v6 = vld [vmem:[%s494_s1 + $0x18] ss:$12 sps:$4 sm:$0xff]   ;;  %v358_v7 = vld [vmem:[%s494_s1 + $0x20] ss:$12 sps:$4 sm:$0xff]  }
   0x3   :  { %183 = vmatpush1.bf16.msra.mxu0 %v353_v3  ;;  %329 = vmatpush3.bf16.msra.mxu1 %v354_v4  ;;  %v359_v8 = vld [vmem:[%s494_s1 + $0x34] ss:$12 sps:$4 sm:$0xff]   ;;  %v361_v9 = vld [vmem:[%s494_s1 + $0x30] ss:$12 sps:$4 sm:$0xff]   ;;  %v362_v10 = vld [vmem:[%s494_s1 + $0x38] ss:$12 sps:$4 sm:$0xff]  }
   0x4   :  { %184 = vmatprep.subr.bf16.mxu0 %v355_v5  ;;  %330 = vmatprep.subr.bf16.mxu1 %v384_v1  ;;  %v363_v11 = vld [vmem:[%s494_s1 + $0x4c] ss:$12 sps:$4 sm:$0xff]   ;;  %v365_v12 = vld [vmem:[%s494_s1 + $0x48] ss:$12 sps:$4 sm:$0xff]   ;;  %v366_v13 = vld [vmem:[%s494_s1 + $0x50] ss:$12 sps:$4 sm:$0xff]  }
   0x5   :  { %v367_v14 = vld [vmem:[%s494_s1 + $0x64] ss:$12 sps:$4 sm:$0xff]   ;;  %v369_v15 = vld [vmem:[%s494_s1 + $0x60] ss:$12 sps:$4 sm:$0xff]   ;;  %v370_v16 = vld [vmem:[%s494_s1 + $0x68] ss:$12 sps:$4 sm:$0xff]  }
   0x6   :  { %v371_v17 = vld [vmem:[%s494_s1 + $0x7c] ss:$12 sps:$4 sm:$0xff]   ;;  %v373_v18 = vld [vmem:[%s494_s1 + $0x78] ss:$12 sps:$4 sm:$0xff]   ;;  %v374_v19 = vld [vmem:[%s494_s1 + $0x80] ss:$12 sps:$4 sm:$0xff]  }
   0x7   :  { %185 = vmatpush1.bf16.msra.mxu0 %v357_v6  ;;  %331 = vmatpush3.bf16.msra.mxu1 %v358_v7  ;;  %v375_v20 = vld [vmem:[%s494_s1 + $0x94] ss:$12 sps:$4 sm:$0xff]   ;;  %v377_v21 = vld [vmem:[%s494_s1 + $0x90] ss:$12 sps:$4 sm:$0xff]   ;;  %v378_v22 = vld [vmem:[%s494_s1 + $0x98] ss:$12 sps:$4 sm:$0xff]  }
   0x8   :  { %186 = vmatprep.subr.bf16.mxu0 %v359_v8  ;;  %332 = vmatprep.subr.bf16.mxu1 %v384_v1  ;;  %v379_v23 = vld [vmem:[%s494_s1 + $0xac] ss:$12 sps:$4 sm:$0xff]   ;;  %v381_v24 = vld [vmem:[%s494_s1 + $0xa8] ss:$12 sps:$4 sm:$0xff]   ;;  %v382_v25 = vld [vmem:[%s494_s1 + $0xb0] ss:$12 sps:$4 sm:$0xff]  }
   0x9   :  { %v383_v26 = vld [vmem:[%s495_s0] sm:$0xff]  }
   0xb   :  { %187 = vmatpush1.bf16.msra.mxu0 %v361_v9  ;;  %333 = vmatpush3.bf16.msra.mxu1 %v362_v10 }
   0xc   :  { %188 = vmatprep.subr.bf16.mxu0 %v363_v11  ;;  %334 = vmatprep.subr.bf16.mxu1 %v384_v1 }
   0xf   :  { %189 = vmatpush1.bf16.msra.mxu0 %v365_v12  ;;  %335 = vmatpush3.bf16.msra.mxu1 %v366_v13 }
  0x10   :  { %190 = vmatprep.subr.bf16.mxu0 %v367_v14  ;;  %336 = vmatprep.subr.bf16.mxu1 %v384_v1 }
  0x13   :  { %191 = vmatpush1.bf16.msra.mxu0 %v369_v15  ;;  %337 = vmatpush3.bf16.msra.mxu1 %v370_v16 }
  0x14   :  { %192 = vmatprep.subr.bf16.mxu0 %v371_v17  ;;  %338 = vmatprep.subr.bf16.mxu1 %v384_v1 }
  0x17   :  { %193 = vmatpush1.bf16.msra.mxu0 %v373_v18  ;;  %339 = vmatpush3.bf16.msra.mxu1 %v374_v19 }
  0x18   :  { %194 = vmatprep.subr.bf16.mxu0 %v375_v20  ;;  %340 = vmatprep.subr.bf16.mxu1 %v384_v1 }
  0x1b   :  { %195 = vmatpush1.bf16.msra.mxu0 %v377_v21  ;;  %341 = vmatpush3.bf16.msra.mxu1 %v378_v22 }
  0x1c   :  { %196 = vmatprep.subr.bf16.mxu0 %v379_v23  ;;  %342 = vmatprep.subr.bf16.mxu1 %v384_v1 }
  0x1f   :  { %197 = vmatpush1.bf16.msra.mxu0 %v381_v24  ;;  %343 = vmatpush3.bf16.msra.mxu1 %v382_v25 }
  0x22   :  { %215 = vmatmul.mubr.bf16.vlgmr.msra.gmra.mrb[0].mxu0 %v383_v26  ;;  %345 = vmatmul.mubr.bf16.vlgmr.msra.gmra.mrb[0].mxu1 %v383_v26 }
  0xf5   :  { %v216_v27 = vpop.f32.mrb[0].mxu0  ;;  %v259_v28 = vpop.f32.mrb[0].mxu1 }
  0xf6   :  { %v218_v29 = vpop.f32.mrb[1].mxu0  ;;  %280 = vst [vmem:[%s496_s3] sm:$0xff] %v259_v28  ;;  %v346_v31 = vpop.f32.mrb[1].mxu1 }
  0xf7   :  { %v317_v30 = vpack.c.bf16 %v218_v29, %v216_v27  ;;  %v220_v32 = vpop.f32.mrb[2].mxu0  ;;  %v262_v33 = vpop.f32.mrb[2].mxu1 }
  0xf8   :  { %v222_v34 = vpop.f32.mrb[3].mxu0  ;;  %281 = vst [vmem:[%s496_s3 + $0x8] sm:$0xff] %v262_v33  ;;  %v347_v36 = vpop.f32.mrb[3].mxu1 }
  0xf9   :  { %278 = vst [vmem:[%s497_s2] sm:$0xff] %v317_v30  ;;  %v318_v35 = vpack.c.bf16 %v222_v34, %v220_v32 }
  0xfb   :  { %279 = vst [vmem:[%s497_s2 + $0x8] sm:$0xff] %v318_v35 }

// kernel: _lambda_.7
= control target key start
LH: loop header
LB: loop body
LE: loop exit
PB: predicated region body
PF: predicated region fallthrough
CT: control target
= control target key end

     0   :  { %v125_v0 = vmov 0.0   ;;  %vm126_vm0 = vmmov 0   ;;  %vm35_vm1 = vcmask 261120   ;;  %s154_s1 = inlined_call_operand.vmem [shape: bf16[32,128], index: 1, kind: input, shape index: {}]   ;;  %s155_s0 = inlined_call_operand.vmem [shape: bf16[16,32], index: 0, kind: input, shape index: {}]   ;;  %s156_s2 = inlined_call_operand.vmem [shape: bf16[16,128], index: 2, kind: output, shape index: {}]  }
   0x1   :  { %112 = vmatprep.subr.bf16.mxu0 %v125_v0  ;;  %v122_v1 = vld [vmem:[%s154_s1] sm:$0xff]   ;;  %116 = vmatprep.mubr.msk.bf16.mxu0 %vm126_vm0, %v125_v0  ;;  %v123_v2 = vld [vmem:[%s154_s1 + $0x8] sm:$0xff]  }
   0x2   :  { %113 = vmatpush3.bf16.msra.mxu0 %v122_v1  ;;  %v124_v3 = vld [vmem:[%s155_s0] sm:$0xff]  }
   0x3   :  { %114 = vmatprep.subr.bf16.mxu0 %v125_v0 }
   0x6   :  { %115 = vmatpush3.bf16.msra.mxu0 %v123_v2 }
   0x9   :  { %117 = vmatmul.mubr.msk.bf16.vlgmr.msra.gmra.mrb[0].mxu0 %vm35_vm1, %v124_v3 }
  0xdc   :  { %v73_v4 = vpop.f32.mrb[0].mxu0 }
  0xdd   :  { %v118_v5 = vpop.f32.mrb[1].mxu0  ;;  %v80_v7 = vmax.f32 %v73_v4, 0.0 }
  0xde   :  { %v76_v6 = vpop.f32.mrb[2].mxu0 }
  0xdf   :  { %v81_v8 = vmax.f32 %v76_v6, 0.0  ;;  %v119_v9 = vpop.f32.mrb[3].mxu0 }
  0xe1   :  { %v107_v10 = vpack.c.bf16 %v81_v8, %v80_v7 }
  0xe3   :  { %108 = vst [vmem:[%s156_s2] sm:$0xff] %v107_v10  }

// kernel: _lambda_.9
= control target key start
LH: loop header
LB: loop body
LE: loop exit
PB: predicated region body
PF: predicated region fallthrough
CT: control target
= control target key end

     0   :  { %v151_v1 = vmov 0.0   ;;  %vm152_vm0 = vmmov 0   ;;  %s203_s0 = inlined_call_operand.vmem [shape: bf16[16,32], index: 0, kind: input, shape index: {}]   ;;  %s204_s1 = inlined_call_operand.vmem [shape: bf16[32,128], index: 1, kind: input, shape index: {}]   ;;  %s205_s2 = inlined_call_operand.vmem [shape: f32[16,128], index: 2, kind: input, shape index: {}]   ;;  %s206_s3 = inlined_call_operand.hbm [shape: f32[16,128], index: 3, kind: output, shape index: {}]  }
   0x1   :  { %v124_v0 = vld [vmem:[%s204_s1] sm:$0xff]   ;;  %111 = vmatprep.subr.bf16.mxu0 %v151_v1  ;;  %v125_v2 = vld [vmem:[%s204_s1 + $0x8] sm:$0xff]   ;;  %115 = vmatprep.mubr.msk.bf16.mxu0 %vm152_vm0, %v151_v1 }
   0x2   :  { %112 = vmatpush3.bf16.msra.mxu0 %v124_v0 }
   0x3   :  { %113 = vmatprep.subr.bf16.mxu0 %v151_v1 }
   0x4   :  { %8 = vsyncpa [#allocation3], 0  ;;  %v126_v3 = vld [vmem:[%s203_s0] sm:$0xff]   ;;  %vm41_vm1 = vcmask 261120   ;;  %s153_s20 = smov [#allocation2]   ;;  %v23_v6 = vld [vmem:[%s205_s2 + $0x8] sm:$0xff] }
   0x5   :  { %v22_v4 = vld [vmem:[%s205_s2] sm:$0xff]  ;;  %s93_s21 = sshll.u32 %s153_s20, 4  ;;  %s94_s21 = int_to_ptr.vmem [resolvable:$true] %s93_s21 }
   0x6   :  { %114 = vmatpush3.bf16.msra.mxu0 %v125_v2  ;;  %s127_s0 = scalar_lea.vmem %s94_s21, 256  ;;  %p132_p1 = scmp.lt.s32.totalorder %s94_s21, %s94_s21 }
   0x7   :  { %p128_p0 = scmp.ne.s32.totalorder %s94_s21, %s127_s0  ;;  %p133_p2 = scmp.lt.s32.totalorder %s127_s0, %s127_s0 }
   0x9   :  { %116 = vmatmul.mubr.msk.bf16.vlgmr.msra.gmra.mrb[0].mxu0 %vm41_vm1, %v126_v3  ;;  %p134_p3 = por %p133_p2, %p132_p1 }
   0xb   :  { %p135_p4 = pnand %p134_p3, %p128_p0 }
  0xdc   :  { %v79_v5 = vpop.f32.mrb[0].mxu0 }
  0xdd   :  { %v80_v7 = vadd.f32 %v79_v5, %v22_v4  ;;  %v117_v8 = vpop.f32.mrb[1].mxu0 }
  0xde   :  { %v82_v9 = vpop.f32.mrb[2].mxu0 }
  0xdf   :  { %86 = vst [vmem:[#allocation2] sm:$0xff] %v80_v7  ;;  %v83_v10 = vadd.f32 %v82_v9, %v23_v6  ;;  %v118_v11 = vpop.f32.mrb[3].mxu0 }
  0xe1   :  { %87 = vst [vmem:[#allocation2 + $0x8] sm:$0xff] %v83_v10 }
  0xe2   :  { %138 = shalt.err (!%p135_p4)
}
  0xe3   :  { %s139_s25 = scalar_lea.hbm %s206_s3, 256 }
  0xe4   :  { %p140_p5 = scmp.ne.s32.totalorder %s206_s3, %s139_s25  ;;  %p143_p6 = scmp.lt.u32.totalorder %s139_s25, %s206_s3 }
  0xe6   :  { %p145_p7 = pnand %p143_p6, %p140_p5 }
  0xe8   :  { %148 = shalt.err (!%p145_p7)
}
  0xe9   :  { %s154_s29 = smov 128   ;;  %s155_s30 = smov 8  }
  0xea   :  { %99 = dma.vmem_to_hbm [thread:$0]  %s94_s21, 256, %s206_s3, [#allocation3], %s154_s29, %s154_s29, %s155_s30  }
  0xeb   :  { %149 = dma.done.wait [#allocation3], 256  }
  0xec   :  { %150 = vsyncadd [#allocation3], 4294967040 }
  0xed   :  { %103 = vsyncpa [#allocation3], 1 }

</bundles_post_ra>
